<compile_context>
chip_gen: v7x
topology: tpu7x:2x2x1
jax: 0.10.0
libtpu: 0.0.40
codegen_flags: <defaults>
</compile_context>

<pallas_src>
import functools
import math

import jax
import jax.numpy as jnp
from jax.experimental import pallas as pl
from jax.experimental.pallas import tpu as pltpu


def _round_up(x, m):
    return -(-x // m) * m


def _make_conv_kernel(kH, kW, stride, Ho, Wo, Cin):
    """Fused conv kernel for one padded NHWC image per grid step."""
    M = Ho * Wo
    K = kH * kW * Cin

    def kernel(x_ref, w_ref, b_ref, o_ref):
        # x_ref: (Hp, Wp, Cin)  bf16  -- one zero-padded NHWC image (pipelined)
        # w_ref: (K, Np)        bf16  -- VMEM-resident weights
        # b_ref: (1, Np)        f32   -- VMEM-resident bias
        # o_ref: (M, Np)        f32   -- lane-dense output tile
        x = x_ref[...]

        # Patch extraction in VMEM: kH*kW shifted views (static slices; for
        # stride==1 these are plain contiguous slices).  Column order is
        # (kh, kw, cin), matching the weight reshape below.
        wins = []
        for kh in range(kH):
            for kw in range(kW):
                win = jax.lax.slice(
                    x,
                    (kh, kw, 0),
                    (kh + (Ho - 1) * stride + 1,
                     kw + (Wo - 1) * stride + 1,
                     Cin),
                    (stride, stride, 1))                 # (Ho, Wo, Cin)
                wins.append(win)
        patches = jnp.concatenate(wins, axis=-1)         # (Ho, Wo, K)
        patches = patches.reshape(M, K)                  # (M, K), K unpadded

        # One MXU GEMM with f32 accumulation, then bias + ReLU.
        acc = jnp.dot(patches, w_ref[...],
                      preferred_element_type=jnp.float32)
        acc = acc + b_ref[...]
        o_ref[...] = jnp.maximum(acc, 0.0).astype(o_ref.dtype)

    return kernel


@functools.partial(jax.jit, static_argnames=("stride", "padding"))
def conv_layer_forward(x, weight, bias, *, stride, padding):
    """x: (B, Cin, H, W) f32 -> relu(conv2d(x)) : (B, Cout, Ho, Wo) f32."""
    B, Cin, H, W = x.shape
    Cout, _, kH, kW = weight.shape
    Ho = (H + 2 * padding - kH) // stride + 1
    Wo = (W + 2 * padding - kW) // stride + 1
    Hp, Wp = H + 2 * padding, W + 2 * padding
    K = kH * kW * Cin
    M = Ho * Wo
    Np = _round_up(Cout, 128)

    # Single boundary layout pass: NCHW -> NHWC, spatial zero-pad, bf16 cast.
    xh = jnp.transpose(x, (0, 2, 3, 1))
    xh = jnp.pad(xh, ((0, 0), (padding, padding), (padding, padding), (0, 0)))
    xh = xh.astype(jnp.bfloat16)

    # Weights: (Cout, Cin, kH, kW) -> (K, Np).  K kept at its true size (no
    # HBM zero-padding); only Cout is padded to a lane-dense 128 multiple.
    w2d = jnp.transpose(weight, (2, 3, 1, 0)).reshape(K, Cout)
    w2d = jnp.pad(w2d, ((0, 0), (0, Np - Cout))).astype(jnp.bfloat16)
    b2d = jnp.pad(bias, (0, Np - Cout)).reshape(1, Np).astype(jnp.float32)

    kernel = _make_conv_kernel(kH, kW, stride, Ho, Wo, Cin)

    cost = pl.CostEstimate(
        flops=2 * B * M * K * Np,
        transcendentals=0,
        bytes_accessed=(xh.size * 2 + w2d.size * 2 + b2d.size * 4
                        + B * M * Np * 4))

    # Per-step VMEM footprint: double-buffered image in / tile out, resident
    # weights+bias, plus in-kernel patch matrix and f32 accumulator.
    vmem_bytes = (2 * Hp * Wp * Cin * 2          # input image (bf16, x2 bufs)
                  + 2 * M * Np * 4               # output tile (f32, x2 bufs)
                  + K * Np * 2 + Np * 4          # resident weights + bias
                  + M * _round_up(K, 128) * 2    # patch matrix (bf16)
                  + M * Np * 4)                  # accumulator (f32)
    if vmem_bytes > 16 * 1024 * 1024:            # exceeds smallest default (v5e)
        compiler_params = pltpu.CompilerParams(
            dimension_semantics=("parallel",),
            vmem_limit_bytes=min(_round_up(2 * vmem_bytes, 1 << 20), 64 << 20))
    else:
        compiler_params = pltpu.CompilerParams(
            dimension_semantics=("parallel",))

    out = pl.pallas_call(
        kernel,
        out_shape=jax.ShapeDtypeStruct((B, M, Np), jnp.float32),
        grid=(B,),
        in_specs=[
            # One padded image per step (batch dim squeezed).
            pl.BlockSpec((None, Hp, Wp, Cin), lambda b: (b, 0, 0, 0)),
            # Weights / bias: constant index_map -> VMEM-resident.
            pl.BlockSpec((K, Np), lambda b: (0, 0)),
            pl.BlockSpec((1, Np), lambda b: (0, 0)),
        ],
        out_specs=pl.BlockSpec((None, M, Np), lambda b: (b, 0, 0)),
        compiler_params=compiler_params,
        cost_estimate=cost,
    )(xh, w2d, b2d)

    # Single boundary pass back to NCHW (slice + reshape + transpose fuse).
    y = out[:, :, :Cout].reshape(B, Ho, Wo, Cout)
    return jnp.transpose(y, (0, 3, 1, 2))


if __name__ == "__main__":
    key = jax.random.PRNGKey(0)

    # Small shapes consistent with the module.
    B, Cin, H, W = 2, 4, 16, 16
    Cout, k, stride, padding = 32, 3, 1, 1

    kx, kw_, kb = jax.random.split(key, 3)
    fan_in = Cin * k * k
    bound = 1.0 / math.sqrt(fan_in)      # PyTorch Conv2d default init bounds
    x = jax.random.normal(kx, (B, Cin, H, W), jnp.float32)
    weight = jax.random.uniform(kw_, (Cout, Cin, k, k), jnp.float32, -bound, bound)
    bias = jax.random.uniform(kb, (Cout,), jnp.float32, -bound, bound)

    y = conv_layer_forward(x, weight, bias, stride=stride, padding=padding)
    y = jax.block_until_ready(y)

    # Pure-JAX f32 reference of Conv2d + ReLU (cross-correlation, like PyTorch).
    ref = jax.lax.conv_general_dilated(
        x, weight, window_strides=(stride, stride),
        padding=((padding, padding), (padding, padding)),
        dimension_numbers=("NCHW", "OIHW", "NCHW"))
    ref = jnp.maximum(ref + bias.reshape(1, Cout, 1, 1), 0.0)

    assert y.shape == ref.shape
    max_err = float(jnp.max(jnp.abs(y - ref)))
    # bf16 operands with f32 accumulation -> small rounding error vs f32 ref.
    assert jnp.allclose(y, ref, atol=3e-2, rtol=3e-2), max_err

    print("KERNEL_OK")
</pallas_src>

<mosaic_0001>
module attributes {stable_mosaic.version = 11 : i64} {
  func.func @kernel(%arg0: i32, %arg1: memref<1x18x18x4xbf16, #tpu.memory_space<vmem>>, %arg2: memref<36x128xbf16, #tpu.memory_space<vmem>>, %arg3: memref<1x128xf32, #tpu.memory_space<vmem>>, %arg4: memref<1x256x128xf32, #tpu.memory_space<vmem>>) attributes {dimension_semantics = [#tpu.dimension_semantics<parallel>], iteration_bounds = array<i64: 2>, scalar_prefetch = 0 : i64, scratch_operands = 0 : i64, tpu.core_type = #tpu.core_type<tc>, window_params = [{transform_indices = @transform_0, window_bounds = array<i64: 1, 18, 18, 4>}, {pipeline_mode = #tpu.pipeline_mode<synchronous>, transform_indices = @transform_1, window_bounds = array<i64: 36, 128>}, {pipeline_mode = #tpu.pipeline_mode<synchronous>, transform_indices = @transform_2, window_bounds = array<i64: 1, 128>}, {transform_indices = @transform_3, window_bounds = array<i64: 1, 256, 128>}]} {
    %c0 = arith.constant 0 : index
    %c0_0 = arith.constant 0 : index
    %c0_1 = arith.constant 0 : index
    %c0_2 = arith.constant 0 : index
    %0 = vector.load %arg1[%c0, %c0_0, %c0_1, %c0_2] : memref<1x18x18x4xbf16, #tpu.memory_space<vmem>>, vector<1x18x18x4xbf16>
    %1 = vector.shape_cast %0 : vector<1x18x18x4xbf16> to vector<18x18x4xbf16>
    %2 = vector.extract_strided_slice %1 {offsets = [0, 0, 0], sizes = [16, 16, 4], strides = [1, 1, 1]} : vector<18x18x4xbf16> to vector<16x16x4xbf16>
    %3 = vector.extract_strided_slice %1 {offsets = [0, 1, 0], sizes = [16, 16, 4], strides = [1, 1, 1]} : vector<18x18x4xbf16> to vector<16x16x4xbf16>
    %4 = vector.extract_strided_slice %1 {offsets = [0, 2, 0], sizes = [16, 16, 4], strides = [1, 1, 1]} : vector<18x18x4xbf16> to vector<16x16x4xbf16>
    %5 = vector.extract_strided_slice %1 {offsets = [1, 0, 0], sizes = [16, 16, 4], strides = [1, 1, 1]} : vector<18x18x4xbf16> to vector<16x16x4xbf16>
    %6 = vector.extract_strided_slice %1 {offsets = [1, 1, 0], sizes = [16, 16, 4], strides = [1, 1, 1]} : vector<18x18x4xbf16> to vector<16x16x4xbf16>
    %7 = vector.extract_strided_slice %1 {offsets = [1, 2, 0], sizes = [16, 16, 4], strides = [1, 1, 1]} : vector<18x18x4xbf16> to vector<16x16x4xbf16>
    %8 = vector.extract_strided_slice %1 {offsets = [2, 0, 0], sizes = [16, 16, 4], strides = [1, 1, 1]} : vector<18x18x4xbf16> to vector<16x16x4xbf16>
    %9 = vector.extract_strided_slice %1 {offsets = [2, 1, 0], sizes = [16, 16, 4], strides = [1, 1, 1]} : vector<18x18x4xbf16> to vector<16x16x4xbf16>
    %10 = vector.extract_strided_slice %1 {offsets = [2, 2, 0], sizes = [16, 16, 4], strides = [1, 1, 1]} : vector<18x18x4xbf16> to vector<16x16x4xbf16>
    %11 = tpu.concatenate %2, %3, %4, %5, %6, %7, %8, %9, %10 in 2 : vector<16x16x4xbf16>, vector<16x16x4xbf16>, vector<16x16x4xbf16>, vector<16x16x4xbf16>, vector<16x16x4xbf16>, vector<16x16x4xbf16>, vector<16x16x4xbf16>, vector<16x16x4xbf16>, vector<16x16x4xbf16> -> vector<16x16x36xbf16>
    %12 = vector.shape_cast %11 : vector<16x16x36xbf16> to vector<256x36xbf16>
    %c0_3 = arith.constant 0 : index
    %c0_4 = arith.constant 0 : index
    %13 = vector.load %arg2[%c0_3, %c0_4] : memref<36x128xbf16, #tpu.memory_space<vmem>>, vector<36x128xbf16>
    %cst = arith.constant dense<0.000000e+00> : vector<256x128xf32>
    %14 = tpu.matmul %12, %13, %cst {dimension_numbers = #tpu.dot_dimension_numbers<[1], [0], [0], [1], [0, 0, 1, 1], [], []>} : vector<256x36xbf16>, vector<36x128xbf16>, vector<256x128xf32> -> vector<256x128xf32>
    %c0_5 = arith.constant 0 : index
    %c0_6 = arith.constant 0 : index
    %15 = vector.load %arg3[%c0_5, %c0_6] : memref<1x128xf32, #tpu.memory_space<vmem>>, vector<1x128xf32>
    %16 = vector.broadcast %15 : vector<1x128xf32> to vector<256x128xf32>
    %17 = arith.addf %14, %16 : vector<256x128xf32>
    %cst_7 = arith.constant 0.000000e+00 : f32
    %18 = vector.broadcast %cst_7 : f32 to vector<256x128xf32>
    %19 = arith.maximumf %17, %18 : vector<256x128xf32>
    %c0_8 = arith.constant 0 : index
    %c0_9 = arith.constant 0 : index
    %c0_10 = arith.constant 0 : index
    %20 = vector.load %arg4[%c0_8, %c0_9, %c0_10] : memref<1x256x128xf32, #tpu.memory_space<vmem>>, vector<1x256x128xf32>
    %21 = vector.shape_cast %20 : vector<1x256x128xf32> to vector<256x128xf32>
    %22 = vector.shape_cast %19 : vector<256x128xf32> to vector<1x256x128xf32>
    tpu.vector_store %arg4[%c0_8, %c0_9, %c0_10], %22 {strides = array<i32>} : memref<1x256x128xf32, #tpu.memory_space<vmem>>, vector<1x256x128xf32>,
    return
  }
  func.func @transform_0(%arg0: i32) -> (i32, i32, i32, i32) {
    %c0_i32 = arith.constant 0 : i32
    %c0_i32_0 = arith.constant 0 : i32
    %c0_i32_1 = arith.constant 0 : i32
    %c0_i32_2 = arith.constant 0 : i32
    return %arg0, %c0_i32, %c0_i32_0, %c0_i32_1 : i32, i32, i32, i32
  }
  func.func @transform_1(%arg0: i32) -> (i32, i32) {
    %c0_i32 = arith.constant 0 : i32
    %c0_i32_0 = arith.constant 0 : i32
    %c0_i32_1 = arith.constant 0 : i32
    return %c0_i32, %c0_i32_0 : i32, i32
  }
  func.func @transform_2(%arg0: i32) -> (i32, i32) {
    %c0_i32 = arith.constant 0 : i32
    %c0_i32_0 = arith.constant 0 : i32
    %c0_i32_1 = arith.constant 0 : i32
    return %c0_i32, %c0_i32_0 : i32, i32
  }
  func.func @transform_3(%arg0: i32) -> (i32, i32, i32) {
    %c0_i32 = arith.constant 0 : i32
    %c0_i32_0 = arith.constant 0 : i32
    %c0_i32_1 = arith.constant 0 : i32
    return %arg0, %c0_i32, %c0_i32_0 : i32, i32, i32
  }
}

</mosaic_0001>

<bundles_post_ra>
// kernel: conv_layer_forward.1
= control target key start
LH: loop header
LB: loop body
LE: loop exit
PB: predicated region body
PF: predicated region fallthrough
CT: control target
= control target key end

     0   :  { %8 = vsyncpa [#allocation3], 0  ;;  %s2684_s0 = inlined_call_operand.vmem [shape: bf16[2,18,18,4], index: 0, kind: input, shape index: {}]   ;;  %s2685_s1 = inlined_call_operand.vmem [shape: bf16[36,128], index: 1, kind: input, shape index: {}]   ;;  %s2686_s2 = inlined_call_operand.vmem [shape: f32[1,128], index: 2, kind: input, shape index: {}]   ;;  %s2687_s3 = inlined_call_operand.hbm [shape: f32[2,256,128], index: 3, kind: output, shape index: {}]  }
   0x1   :  { %10 = vsyncpa [#allocation3 + $0x1], 0  ;;  %s1841_s12 = smov 0   ;;  %s1843_s13 = smov 0  }
   0x2   :  { %s1845_s14 = smov 0   ;;  %s1847_s15 = smov 0  }
   0x3 LB: > { %s1862_s16 = sadd.s32 4294967295, %s1809_s15   ;;  %s1525_s17 = sadd.s32 4294967294, %s1809_s15   ;;  %s1809_s15 = sphi %s1847_s15, %s2693_s15   ;;  %s1805_s14 = sphi %s1845_s14, %s2692_s14   ;;  %s1801_s13 = sphi %s1843_s13, %s2691_s13   ;;  %s1797_s12 = sphi %s1841_s12, %s2690_s12  }
   0x4   : > { %s1866_s18 = sadd.s32 1, %s1809_s15   ;;  %s91_s19 = sadd.s32 1, %s1805_s14 }
   0x5   : > { %s88_s20 = ssub.s32 %s1809_s15, %s1866_s18  ;;  %p101_p0 = scmp.ne.s32.totalorder %s1805_s14, %s1801_s13 }
   0x6   : > { %p89_p1 = scmp.eq.s32.totalorder %s88_s20, 0  ;;  %p102_p2 = scmp.eq.s32.totalorder %s1862_s16, 1 }
   0x7   : > { %p107_p3 = scmp.ne.s32.totalorder %s1801_s13, %s1797_s12  ;;  %p108_p4 = scmp.eq.s32.totalorder %s1525_s17, 1 }
   0x8   : > { %s1877_s21 = scalar_select %p89_p1, %s1805_s14, %s91_s19  }
   0x9   : > { %p1879_p5 = por %p102_p2, %p101_p0  ;;  %p1883_p6 = por %p108_p4, %p107_p3 }
   0xa   : > { %p1528_p7 = scmp.ge.s32.totalorder %s1809_s15, 1  ;;  %p140_p8 = scmp.lt.s32.totalorder %s1809_s15, 3 }
   0xc   : > { %p141_p9 = pnand %p1528_p7, %p140_p8 }
   0xd   : > { %p164_p10 = scmp.lt.s32.totalorder (!%p141_p9), %s1862_s16, 1  ;;  %vm577_vm0 = vcmask (!%p141_p9), 1046528   ;;  %s1811_s29 = smov (!%p141_p9), 12   ;;  %vm352_vm1 = vsmask.f32 (!%p141_p9), 7424  ;;  %vm1220_vm2 = vcmask (!%p141_p9), 1041408  }
   0xe   : > { %144 = sbr.rel (%p141_p9) target bundleno = 630 (0x276), region = 32  ;;  %s1812_s30 = smov (!%p141_p9), 8   ;;  %vm896_vm3 = vcmask (!%p141_p9), 31744   ;;  %vm929_vm4 = vcmask (!%p141_p9), 64512   ;;  %vm995_vm5 = vcmask (!%p141_p9), 130048   ;;  %vm962_vm6 = vcmask (!%p141_p9), 97280  }
   0xf   : > { %s1813_s4 = smov (!%p141_p9), 4   ;;  %s1814_s5 = smov (!%p141_p9), 16   ;;  %vm1028_vm7 = vcmask (!%p141_p9), 162816   ;;  %vm1061_vm8 = vcmask (!%p141_p9), 195584   ;;  %vm1094_vm9 = vcmask (!%p141_p9), 228352   ;;  %vm1127_vm10 = vcmask (!%p141_p9), 261120  }
  0x10   : > { %s1815_s6 = smov (!%p141_p9), 20   ;;  %s1816_s7 = smov (!%p141_p9), 24   ;;  %vm1187_vm11 = vcmask (!%p141_p9), 293888  }
  0x11   : > { %s1817_s17 = smov (!%p141_p9), 28   ;;  %s1819_s10 = smov (!%p141_p9), [#allocation2]  }
  0x12   : > { %s1751_s11 = sshll.u32 (!%p141_p9), %s1819_s10, 4  ;;  %s1752_s11 = int_to_ptr.vmem [resolvable:$false] %s1751_s11 }
  0x15   : > { %s165_s24 = scalar_select %p164_p10, %s1862_s16, 1 }
  0x17   : > { %s1658_s25 = smul.u32 216, %s165_s24  ;;  %s1818_s24 = smov 32  }
  0x19   : > { %s1894_s28 = scalar_lea.vmem %s2684_s0, %s1658_s25  ;;  %s161_s25 = sand.u32 1, %s1801_s13  }
  0x1a   : > { %v1897_v0 = vld [vmem:[%s1894_s28 + $0x6c] sm:$0xff]   ;;  %v1907_v2 = vld [vmem:[%s1894_s28 + $0x60] sm:$0xff]   ;;  %v1710_v3 = vld [vmem:[%s1894_s28 + $0x68] ss:$0 sps:$4 sm:$0x11]   ;;  %s2642_s8 = scalar_lea.sflag [#allocation3], %s161_s25 }
  0x1b   : > { %v1900_v1 = vld [vmem:[%s1894_s28 + $0xc] sm:$0xff]   ;;  %679 = vrot.lane.b32.xlu1 %v1897_v0, %s1811_s29  ;;  %v1911_v4 = vld [vmem:[%s1894_s28] sm:$0xff]   ;;  %v605_v5 = vrot.slane %v1897_v0, 1  ;;  %v602_v6 = vrot.slane %v1907_v2, 1  ;;  %v603_v7 = vrot.slane %v1710_v3, 1  ;;  %v462_v26 = vshrl.u32 %v1897_v0, 16 }
  0x1c   : > { %663 = vrot.lane.b32.xlu0 %v1900_v1, %s1811_s29  ;;  %v1712_v8 = vld [vmem:[%s1894_s28 + $0x8] ss:$0 sps:$4 sm:$0x11]   ;;  %v581_v9 = vrot.slane %v1900_v1, 1  ;;  %v578_v10 = vrot.slane %v1911_v4, 1  ;;  %v366_v16 = vshrl.u32 %v1900_v1, 16 }
  0x1d   : > { %v1713_v11 = vld [vmem:[%s1894_s28 + $0x74] ss:$0 sps:$4 sm:$0x11]   ;;  %v1920_v12 = vsel %vm577_vm0, %v602_v6, %v603_v7  ;;  %v579_v13 = vrot.slane %v1712_v8, 1  ;;  %v368_v17 = vshll.u32 %v1900_v1, 16  ;;  %v354_v18 = vshrl.u32 %v1911_v4, 16 }
  0x1e   : > { %v1714_v14 = vld [vmem:[%s1894_s28 + $0x14] ss:$0 sps:$4 sm:$0x11]   ;;  %v606_v15 = vrot.slane %v1713_v11, 1  ;;  %v356_v22 = vshll.u32 %v1911_v4, 16  ;;  %v361_v25 = vshll.u32 %v1712_v8, 16 }
  0x1f   : > { %642 = vrot.lane.b32.xlu1 %v1920_v12, %s1812_s30  ;;  %v580_v19 = vsel %vm577_vm0, %v578_v10, %v579_v13  ;;  %v582_v20 = vrot.slane %v1714_v14, 1  ;;  %v373_v21 = vshll.u32 %v1714_v14, 16  ;;  %v370_v24 = vrot.slane %v368_v17, 1  ;;  %v1942_v39 = vld [vmem:[%s1894_s28 + $0x78] sm:$0xff]   ;;  %v1990_v10 = vld [vmem:[%s1894_s28 + $0x84] sm:$0xff]  }
  0x20   : > { %626 = vrot.lane.b32.xlu0 %v580_v19, %s1812_s30  ;;  %v1932_v23 = vsel %vm577_vm0, %v605_v5, %v606_v15  ;;  %v358_v29 = vrot.slane %v356_v22, 1  ;;  %v464_v30 = vshll.u32 %v1897_v0, 16  ;;  %v363_v32 = vrot.slane %v361_v25, 1  ;;  %v1948_v46 = vld [vmem:[%s1894_s28 + $0x18] sm:$0xff]   ;;  %v2000_v14 = vld [vmem:[%s1894_s28 + $0x24] sm:$0xff]  }
  0x21   : > { %v583_v27 = vsel %vm577_vm0, %v581_v9, %v582_v20  ;;  %v375_v28 = vrot.slane %v373_v21, 1  ;;  %v371_v31 = vor.u32 %v370_v24, %v366_v16  ;;  %v469_v33 = vshll.u32 %v1713_v11, 16  ;;  %v1717_v47 = vld [vmem:[%s1894_s28 + $0x80] ss:$0 sps:$4 sm:$0x11]  }
  0x22   : > { %v450_v34 = vshrl.u32 %v1907_v2, 16  ;;  %v359_v35 = vor.u32 %v358_v29, %v354_v18  ;;  %v466_v36 = vrot.slane %v464_v30, 1  ;;  %v452_v37 = vshll.u32 %v1907_v2, 16  ;;  %v1718_v52 = vld [vmem:[%s1894_s28 + $0x20] ss:$0 sps:$4 sm:$0x11]  }
  0x23   : > { %644 = vrot.lane.b32.xlu1 %v1932_v23, %s1812_s30  ;;  %v457_v38 = vshll.u32 %v1710_v3, 16  ;;  %v376_v40 = vsel %vm352_vm1, %v371_v31, %v375_v28  ;;  %v471_v41 = vrot.slane %v469_v33, 1  ;;  %v476_v50 = vshll.u32 %v1942_v39, 16  ;;  %v1721_v15 = vld [vmem:[%s1894_s28 + $0x8c] ss:$0 sps:$4 sm:$0x11]  }
  0x24   : > { %628 = vrot.lane.b32.xlu0 %v583_v27, %s1812_s30  ;;  %v364_v42 = vsel %vm352_vm1, %v359_v35, %v363_v32  ;;  %v467_v43 = vor.u32 %v466_v36, %v462_v26  ;;  %v454_v44 = vrot.slane %v452_v37, 1  ;;  %v380_v53 = vshll.u32 %v1948_v46, 16  ;;  %v1722_v18 = vld [vmem:[%s1894_s28 + $0x2c] ss:$0 sps:$4 sm:$0x11]   ;;  %v1735_v22 = vld [vmem:[%s2685_s1] sm:$0xff]  }
  0x25   : > { %v459_v45 = vrot.slane %v457_v38, 1  ;;  %v474_v54 = vshrl.u32 %v1942_v39, 16  ;;  %v478_v55 = vrot.slane %v476_v50, 1  ;;  %v481_v56 = vshll.u32 %v1717_v47, 16  ;;  %1612 = vmatprep.subr.bf16.mxu0 %v1735_v22  ;;  %1650 = vmatprep.subr.bf16.mxu1 %v1735_v22 }
  0x26   : > { %v1953_v48 = vsel %vm352_vm1, %v467_v43, %v471_v41  ;;  %v455_v49 = vor.u32 %v454_v44, %v450_v34  ;;  %v378_v57 = vshrl.u32 %v1948_v46, 16  ;;  %v382_v58 = vrot.slane %v380_v53, 1  ;;  %1613 = vmatpush3.bf16.msra.mxu0 %v1735_v22  ;;  %1653 = vmatpush3.bf16.msra.mxu1 %v1735_v22  ;;  %v1739_v32 = vld [vmem:[%s2685_s1 + $0x10] ss:$0 sps:$4 sm:$0x33]  }
  0x27   : > { %547 = vrot.lane.b32.xlu1 %v376_v40, %s1813_s4  ;;  %v385_v59 = vshll.u32 %v1718_v52, 16  ;;  %v479_v60 = vor.u32 %v478_v55, %v474_v54  ;;  %v483_v61 = vrot.slane %v481_v56, 1  ;;  %v608_v6 = vrot.slane %v1942_v39, 1  ;;  %v2056_v43 = vld [vmem:[%s1894_s28 + $0x90] sm:$0xff]  }
  0x28   : > { %545 = vrot.lane.b32.xlu0 %v364_v42, %s1813_s4  ;;  %v1958_v51 = vsel %vm352_vm1, %v455_v49, %v459_v45  ;;  %v383_v62 = vor.u32 %v382_v58, %v378_v57  ;;  %v609_v7 = vrot.slane %v1717_v47, 1  ;;  %v584_v8 = vrot.slane %v1948_v46, 1  ;;  %v2061_v44 = vld [vmem:[%s1894_s28 + $0x30] sm:$0xff]   ;;  %v1725_v45 = vld [vmem:[%s1894_s28 + $0x98] ss:$0 sps:$4 sm:$0x11]  }
  0x29   : > { %v387_v63 = vrot.slane %v385_v59, 1  ;;  %v1975_v3 = vsel %vm352_vm1, %v479_v60, %v483_v61  ;;  %v585_v9 = vrot.slane %v1718_v52, 1  ;;  %v488_v16 = vshll.u32 %v1990_v10, 16  ;;  %v1726_v49 = vld [vmem:[%s1894_s28 + $0x38] ss:$0 sps:$4 sm:$0x11]  }
  0x2a   : > { %v1993_v11 = vsel %vm577_vm0, %v608_v6, %v609_v7  ;;  %v486_v17 = vshrl.u32 %v1990_v10, 16  ;;  %v493_v19 = vshll.u32 %v1721_v15, 16  ;;  %v392_v20 = vshll.u32 %v2000_v14, 16 }
  0x2b   : > { %563 = vrot.lane.b32.xlu1 %v1953_v48, %s1813_s4  ;;  %v1979_v5 = vsel %vm352_vm1, %v383_v62, %v387_v63  ;;  %v1997_v13 = vsel %vm577_vm0, %v584_v8, %v585_v9  ;;  %v490_v21 = vrot.slane %v488_v16, 1  ;;  %v390_v24 = vshrl.u32 %v2000_v14, 16  ;;  %v2090_v9 = vld [vmem:[%s1894_s28 + $0x9c] sm:$0xff]  }
  0x2c   : > { %561 = vrot.lane.b32.xlu0 %v1958_v51, %s1813_s4  ;;  %v394_v25 = vrot.slane %v392_v20, 1  ;;  %v397_v26 = vshll.u32 %v1722_v18, 16  ;;  %v495_v29 = vrot.slane %v493_v19, 1  ;;  %v1222_v34 = vsel %vm1220_vm2, %v1739_v32, 0 }
  0x2d   : > { %v491_v28 = vor.u32 %v490_v21, %v486_v17  ;;  %v611_v36 = vrot.slane %v1990_v10, 1  ;;  %v612_v37 = vrot.slane %v1721_v15, 1  ;;  %v587_v38 = vrot.slane %v2000_v14, 1  ;;  %v1729_v15 = vld [vmem:[%s1894_s28 + $0xa4] ss:$0 sps:$4 sm:$0x11]  }
  0x2e   : > { %v395_v30 = vor.u32 %v394_v25, %v390_v24  ;;  %v399_v31 = vrot.slane %v397_v26, 1  ;;  %v500_v47 = vshll.u32 %v2056_v43, 16  ;;  %v404_v50 = vshll.u32 %v2061_v44, 16  ;;  %v1730_v17 = vld [vmem:[%s1894_s28 + $0x44] ss:$0 sps:$4 sm:$0x11]  }
  0x2f   : > { %681 = vrot.lane.b32.xlu1 %v1942_v39, %s1811_s29  ;;  %v496_v33 = vsel %vm352_vm1, %v491_v28, %v495_v29  ;;  %v613_v41 = vsel %vm577_vm0, %v611_v36, %v612_v37  ;;  %v498_v52 = vshrl.u32 %v2056_v43, 16  ;;  %v505_v54 = vshll.u32 %v1725_v45, 16 }
  0x30   : > { %665 = vrot.lane.b32.xlu0 %v1948_v46, %s1811_s29  ;;  %v400_v35 = vsel %vm352_vm1, %v395_v30, %v399_v31  ;;  %v502_v53 = vrot.slane %v500_v47, 1  ;;  %v402_v55 = vshrl.u32 %v2061_v44, 16  ;;  %v406_v56 = vrot.slane %v404_v50, 1 }
  0x31   : > { %v409_v57 = vshll.u32 %v1726_v49, 16  ;;  %v507_v59 = vrot.slane %v505_v54, 1  ;;  %v590_v6 = vrot.slane %v2061_v44, 1  ;;  %v591_v7 = vrot.slane %v1726_v49, 1 }
  0x32   : > { %v503_v58 = vor.u32 %v502_v53, %v498_v52  ;;  %v407_v60 = vor.u32 %v406_v56, %v402_v55  ;;  %v512_v16 = vshll.u32 %v2090_v9, 16  ;;  %v510_v19 = vshrl.u32 %v2090_v9, 16  ;;  %v2156_v56 = vld [vmem:[%s1894_s28 + $0xa8] sm:$0xff]  }
  0x33   : > { %726 = vrot.lane.b32.xlu1 %v1953_v48, %s1814_s5  ;;  %v411_v61 = vrot.slane %v409_v57, 1  ;;  %v517_v21 = vshll.u32 %v1729_v15, 16  ;;  %v421_v25 = vshll.u32 %v1730_v17, 16  ;;  %v617_v36 = vrot.slane %v2090_v9, 1 }
  0x34   : > { %710 = vrot.lane.b32.xlu0 %v376_v40, %s1814_s5  ;;  %v588_v40 = vrot.slane %v1722_v18, 1  ;;  %v508_v62 = vsel %vm352_vm1, %v503_v58, %v507_v59  ;;  %v514_v20 = vrot.slane %v512_v16, 1  ;;  %v618_v37 = vrot.slane %v1729_v15, 1  ;;  %v2162_v58 = vld [vmem:[%s1894_s28 + $0x48] sm:$0xff]  }
  0x35   : > { %v412_v63 = vsel %vm352_vm1, %v407_v60, %v411_v61  ;;  %v423_v29 = vrot.slane %v421_v25, 1  ;;  %v1733_v60 = vld [vmem:[%s1894_s28 + $0xb0] ss:$0 sps:$4 sm:$0x11]   ;;  %v524_v61 = vshll.u32 %v2156_v56, 16  ;;  %v426_v15 = vshrl.u32 %v2162_v58, 16 }
  0x36   : > { %v589_v42 = vsel %vm577_vm0, %v587_v38, %v588_v40  ;;  %v515_v26 = vor.u32 %v514_v20, %v510_v19 }
  0x37   : > { %728 = vrot.lane.b32.xlu1 %v1975_v3, %s1814_s5 }
  0x38   : > { %712 = vrot.lane.b32.xlu0 %v1979_v5, %s1814_s5 }
  0x3b   : > { %761 = vrot.lane.b32.xlu1 %v1932_v23, %s1815_s6 }
  0x3c   : > { %745 = vrot.lane.b32.xlu0 %v583_v27, %s1815_s6  ;;  %v1736_v27 = vld [vmem:[%s2685_s1 + $0x8] sm:$0xff]  }
  0x3d   : > { %1614 = vmatprep.subr.bf16.mxu0 %v1736_v27  ;;  %1651 = vmatprep.subr.bf16.mxu1 %v1736_v27 }
  0x3e   : > { %1615 = vmatpush3.bf16.msra.mxu0 %v1736_v27  ;;  %1654 = vmatpush3.bf16.msra.mxu1 %v1736_v27  ;;  %v519_v27 = vrot.slane %v517_v21, 1 }
  0x3f   : > { %763 = vrot.lane.b32.xlu1 %v1993_v11, %s1815_s6  ;;  %1656 = vmatprep.subr.msk.bf16.mxu0 %vm1220_vm2, %v1739_v32 }
  0x40   : > { %747 = vrot.lane.b32.xlu0 %v1997_v13, %s1815_s6  ;;  %1657 = vmatprep.subr.msk.bf16.mxu1 %vm1220_vm2, %v1739_v32  ;;  %v520_v31 = vsel %vm352_vm1, %v515_v26, %v519_v27 }
  0x42   : > { %1617 = vmatpush3.bf16.msra.mxu0 %v1222_v34  ;;  %1655 = vmatpush3.bf16.msra.mxu1 %v1222_v34 }
  0x43   : > { %798 = vrot.lane.b32.xlu1 %v1942_v39, %s1816_s7 }
  0x44   : > { %782 = vrot.lane.b32.xlu0 %v1948_v46, %s1816_s7 }
  0x47   : > { %800 = vrot.lane.b32.xlu1 %v1990_v10, %s1816_s7 }
  0x48   : > { %784 = vrot.lane.b32.xlu0 %v2000_v14, %s1816_s7 }
  0x4b   : > { %845 = vrot.lane.b32.xlu1 %v1975_v3, %s1817_s17 }
  0x4c   : > { %829 = vrot.lane.b32.xlu0 %v1979_v5, %s1817_s17 }
  0x4f   : > { %847 = vrot.lane.b32.xlu1 %v496_v33, %s1817_s17 }
  0x50   : > { %831 = vrot.lane.b32.xlu0 %v400_v35, %s1817_s17 }
  0x53   : > { %880 = vrot.lane.b32.xlu1 %v1993_v11, %s1818_s24 }
  0x54   : > { %864 = vrot.lane.b32.xlu0 %v1997_v13, %s1818_s24 }
  0x57   : > { %565 = vrot.lane.b32.xlu1 %v1975_v3, %s1813_s4  ;;  %v614_v3 = vrot.slane %v2056_v43, 1 }
  0x58   : > { %549 = vrot.lane.b32.xlu0 %v1979_v5, %s1813_s4  ;;  %v615_v5 = vrot.slane %v1725_v45, 1  ;;  %v619_v45 = vsel %vm577_vm0, %v617_v36, %v618_v37  ;;  %v620_v36 = vrot.slane %v2156_v56, 1  ;;  %v621_v37 = vrot.slane %v1733_v60, 1 }
  0x5a   : > { %v616_v8 = vsel %vm577_vm0, %v614_v3, %v615_v5  ;;  %v428_v3 = vshll.u32 %v2162_v58, 16 }
  0x5b   : > { %882 = vrot.lane.b32.xlu1 %v613_v41, %s1818_s24 }
  0x5c   : > { %866 = vrot.lane.b32.xlu0 %v589_v42, %s1818_s24  ;;  %v430_v16 = vrot.slane %v428_v3, 1  ;;  %v2218_v3 = vld [vmem:[%s1894_s28 + $0xb4] sm:$0xff]  }
  0x5f   : > { %567 = vrot.lane.b32.xlu1 %v496_v33, %s1813_s4 }
  0x60   : > { %551 = vrot.lane.b32.xlu0 %v400_v35, %s1813_s4 }
  0x63   : > { %646 = vrot.lane.b32.xlu1 %v1993_v11, %s1812_s30  ;;  %v592_v11 = vsel %vm577_vm0, %v590_v6, %v591_v7  ;;  %v522_v6 = vshrl.u32 %v2156_v56, 16  ;;  %v526_v7 = vrot.slane %v524_v61, 1 }
  0x64   : > { %630 = vrot.lane.b32.xlu0 %v1997_v13, %s1812_s30  ;;  %v2095_v13 = vld [vmem:[%s1894_s28 + $0x3c] sm:$0xff]  }
  0x65   : > { %v416_v18 = vshll.u32 %v2095_v13, 16  ;;  %v414_v22 = vshrl.u32 %v2095_v13, 16  ;;  %v593_v40 = vrot.slane %v2095_v13, 1  ;;  %v527_v19 = vor.u32 %v526_v7, %v522_v6 }
  0x67   : > { %648 = vrot.lane.b32.xlu1 %v613_v41, %s1812_s30  ;;  %v418_v24 = vrot.slane %v416_v18, 1 }
  0x68   : > { %632 = vrot.lane.b32.xlu0 %v589_v42, %s1812_s30 }
  0x69   : > { %v419_v28 = vor.u32 %v418_v24, %v414_v22  ;;  %v431_v22 = vor.u32 %v430_v16, %v426_v15 }
  0x6b   : > { %683 = vrot.lane.b32.xlu1 %v1990_v10, %s1811_s29 }
  0x6c   : > { %667 = vrot.lane.b32.xlu0 %v2000_v14, %s1811_s29 }
  0x6f   : > { %685 = vrot.lane.b32.xlu1 %v2056_v43, %s1811_s29 }
  0x70   : > { %669 = vrot.lane.b32.xlu0 %v2061_v44, %s1811_s29 }
  0x73   : > { %730 = vrot.lane.b32.xlu1 %v496_v33, %s1814_s5  ;;  %v424_v33 = vsel %vm352_vm1, %v419_v28, %v423_v29 }
  0x74   : > { %714 = vrot.lane.b32.xlu0 %v400_v35, %s1814_s5 }
  0x77   : > { %732 = vrot.lane.b32.xlu1 %v508_v62, %s1814_s5 }
  0x78   : > { %716 = vrot.lane.b32.xlu0 %v412_v63, %s1814_s5 }
  0x7b   : > { %765 = vrot.lane.b32.xlu1 %v613_v41, %s1815_s6  ;;  %v594_v41 = vrot.slane %v1730_v17, 1 }
  0x7c   : > { %749 = vrot.lane.b32.xlu0 %v589_v42, %s1815_s6 }
  0x7d   : > { %v2141_v49 = vsel %vm577_vm0, %v593_v40, %v594_v41 }
  0x7f   : > { %767 = vrot.lane.b32.xlu1 %v616_v8, %s1815_s6 }
  0x80   : > { %751 = vrot.lane.b32.xlu0 %v592_v11, %s1815_s6 }
  0x83   : > { %802 = vrot.lane.b32.xlu1 %v2056_v43, %s1816_s7 }
  0x84   : > { %786 = vrot.lane.b32.xlu0 %v2061_v44, %s1816_s7 }
  0x87   : > { %804 = vrot.lane.b32.xlu1 %v2090_v9, %s1816_s7 }
  0x88   : > { %788 = vrot.lane.b32.xlu0 %v2095_v13, %s1816_s7 }
  0x8b   : > { %849 = vrot.lane.b32.xlu1 %v508_v62, %s1817_s17 }
  0x8c   : > { %833 = vrot.lane.b32.xlu0 %v412_v63, %s1817_s17 }
  0x8d   : > { %v2114_v30 = vpop.permute.xlu1 %679 }
  0x8e   : > { %v2118_v32 = vpop.permute.xlu0 %663 }
  0x8f   : > { %851 = vrot.lane.b32.xlu1 %v520_v31, %s1817_s17 }
  0x90   : > { %835 = vrot.lane.b32.xlu0 %v424_v33, %s1817_s17 }
  0x91   : > { %v2123_v34 = vpop.permute.xlu1 %642 }
  0x92   : > { %v2125_v35 = vpop.permute.xlu0 %626 }
  0x93   : > { %884 = vrot.lane.b32.xlu1 %v616_v8, %s1818_s24 }
  0x94   : > { %868 = vrot.lane.b32.xlu0 %v592_v11, %s1818_s24 }
  0x95   : > { %v2130_v38 = vpop.permute.xlu1 %644 }
  0x96   : > { %v2133_v42 = vpop.permute.xlu0 %628 }
  0x97   : > { %569 = vrot.lane.b32.xlu1 %v508_v62, %s1813_s4 }
  0x98   : > { %553 = vrot.lane.b32.xlu0 %v412_v63, %s1813_s4  ;;  %v1734_v63 = vld [vmem:[%s1894_s28 + $0x50] ss:$0 sps:$4 sm:$0x11]  }
  0x99   : > { %v2138_v47 = vpop.permute.xlu1 %547  ;;  %v433_v17 = vshll.u32 %v1734_v63, 16  ;;  %v597_v40 = vrot.slane %v1734_v63, 1 }
  0x9a   : > { %v546_v50 = vpop.permute.xlu0 %545 }
  0x9b   : > { %886 = vrot.lane.b32.xlu1 %v619_v45, %s1818_s24  ;;  %v435_v24 = vrot.slane %v433_v17, 1  ;;  %v898_v6 = vsel %vm896_vm3, %v1911_v4, %v546_v50 }
  0x9c   : > { %870 = vrot.lane.b32.xlu0 %v2141_v49, %s1818_s24  ;;  %v931_v4 = vsel %vm929_vm4, %v898_v6, %v2125_v35  ;;  %v2247_v35 = vld [vmem:[%s1894_s28 + $0x5c] ss:$0 sps:$4 sm:$0x11]  }
  0x9d   : > { %v2146_v52 = vpop.permute.xlu1 %563  ;;  %v2199_v28 = vsel %vm352_vm1, %v431_v22, %v435_v24  ;;  %v534_v22 = vshrl.u32 %v2218_v3, 16 }
  0x9e   : > { %v562_v53 = vpop.permute.xlu0 %561 }
  0x9f   : > { %571 = vrot.lane.b32.xlu1 %v520_v31, %s1813_s4  ;;  %v914_v41 = vsel %vm896_vm3, %v1907_v2, %v562_v53 }
  0xa0   : > { %555 = vrot.lane.b32.xlu0 %v424_v33, %s1813_s4  ;;  %v947_v53 = vsel %vm929_vm4, %v914_v41, %v2123_v34  ;;  %v536_v34 = vshll.u32 %v2218_v3, 16 }
  0xa1   : > { %v2150_v54 = vpop.permute.xlu1 %681  ;;  %v980_v50 = vsel %vm962_vm6, %v947_v53, %v2114_v30  ;;  %v445_v53 = vshll.u32 %v2247_v35, 16 }
  0xa2   : > { %v2152_v55 = vpop.permute.xlu0 %665 }
  0xa3   : > { %650 = vrot.lane.b32.xlu1 %v616_v8, %s1812_s30  ;;  %v529_v8 = vshll.u32 %v1733_v60, 16  ;;  %v2215_v60 = vsel %vm577_vm0, %v620_v36, %v621_v37  ;;  %v538_v36 = vrot.slane %v536_v34, 1 }
  0xa4   : > { %634 = vrot.lane.b32.xlu0 %v592_v11, %s1812_s30 }
  0xa5   : > { %v2159_v57 = vpop.permute.xlu1 %726  ;;  %v531_v20 = vrot.slane %v529_v8, 1 }
  0xa6   : > { %v2164_v59 = vpop.permute.xlu0 %710  ;;  %v1013_v16 = vsel %vm995_vm5, %v980_v50, %v2159_v57 }
  0xa7   : > { %652 = vrot.lane.b32.xlu1 %v619_v45, %s1812_s30  ;;  %v2195_v26 = vsel %vm352_vm1, %v527_v19, %v531_v20  ;;  %v964_v19 = vsel %vm962_vm6, %v931_v4, %v2118_v32  ;;  %v916_v32 = vsel %vm896_vm3, %v1897_v0, %v2146_v52  ;;  %v900_v0 = vsel %vm896_vm3, %v1900_v1, %v2138_v47 }
  0xa8   : > { %636 = vrot.lane.b32.xlu0 %v2141_v49, %s1812_s30  ;;  %v997_v57 = vsel %vm995_vm5, %v964_v19, %v2164_v59  ;;  %v539_v4 = vor.u32 %v538_v36, %v534_v22  ;;  %v933_v47 = vsel %vm929_vm4, %v900_v0, %v2133_v42 }
  0xa9   : > { %v2171_v62 = vpop.permute.xlu1 %728 }
  0xaa   : > { %v2175_v5 = vpop.permute.xlu0 %712 }
  0xab   : > { %687 = vrot.lane.b32.xlu1 %v2090_v9, %s1811_s29 }
  0xac   : > { %671 = vrot.lane.b32.xlu0 %v2095_v13, %s1811_s29 }
  0xad   : > { %v762_v11 = vpop.permute.xlu1 %761 }
  0xae   : > { %v2183_v18 = vpop.permute.xlu0 %745  ;;  %v1046_v20 = vsel %vm1028_vm7, %v1013_v16, %v762_v11  ;;  %v447_v16 = vrot.slane %v445_v53, 1  ;;  %v1742_v53 = vld [vmem:[%s1894_s28 + $0xc0] sm:$0xff]  }
  0xaf   : > { %689 = vrot.lane.b32.xlu1 %v2156_v56, %s1811_s29  ;;  %v1030_v11 = vsel %vm1028_vm7, %v997_v57, %v2183_v18 }
  0xb0   : > { %673 = vrot.lane.b32.xlu0 %v2162_v58, %s1811_s29 }
  0xb1   : > { %v2189_v21 = vpop.permute.xlu1 %763 }
  0xb2   : > { %v2191_v25 = vpop.permute.xlu0 %747 }
  0xb3   : > { %734 = vrot.lane.b32.xlu1 %v520_v31, %s1814_s5 }
  0xb4   : > { %718 = vrot.lane.b32.xlu0 %v424_v33, %s1814_s5  ;;  %v596_v33 = vrot.slane %v2162_v58, 1 }
  0xb5   : > { %v799_v27 = vpop.permute.xlu1 %798 }
  0xb6   : > { %v783_v29 = vpop.permute.xlu0 %782  ;;  %v2227_v7 = vsel %vm577_vm0, %v596_v33, %v597_v40  ;;  %v1079_v24 = vsel %vm1061_vm8, %v1046_v20, %v799_v27 }
  0xb7   : > { %736 = vrot.lane.b32.xlu1 %v2195_v26, %s1814_s5  ;;  %v1063_v27 = vsel %vm1061_vm8, %v1030_v11, %v783_v29  ;;  %v949_v29 = vsel %vm929_vm4, %v916_v32, %v2130_v38 }
  0xb8   : > { %720 = vrot.lane.b32.xlu0 %v2199_v28, %s1814_s5  ;;  %v982_v50 = vsel %vm962_vm6, %v949_v29, %v2150_v54  ;;  %v701_v29 = vshll.u32 %v1742_v53, 16 }
  0xb9   : > { %v2206_v31 = vpop.permute.xlu1 %800  ;;  %v1015_v38 = vsel %vm995_vm5, %v982_v50, %v2171_v62 }
  0xba   : > { %v2211_v61 = vpop.permute.xlu0 %784  ;;  %v1048_v54 = vsel %vm1028_vm7, %v1015_v38, %v2189_v21 }
  0xbb   : > { %769 = vrot.lane.b32.xlu1 %v619_v45, %s1815_s6  ;;  %v2230_v45 = vld [vmem:[%s1894_s28 + $0x54] sm:$0xff]   ;;  %v1081_v42 = vsel %vm1061_vm8, %v1048_v54, %v2206_v31 }
  0xbc   : > { %753 = vrot.lane.b32.xlu0 %v2141_v49, %s1815_s6  ;;  %v2237_v49 = vld [vmem:[%s1894_s28 + $0xbc] ss:$0 sps:$4 sm:$0x11]   ;;  %v440_v17 = vshll.u32 %v2230_v45, 16  ;;  %v438_v59 = vshrl.u32 %v2230_v45, 16  ;;  %v599_v11 = vrot.slane %v2230_v45, 1 }
  0xbd   : > { %v846_v63 = vpop.permute.xlu1 %845  ;;  %v541_v37 = vshll.u32 %v2237_v49, 16 }
  0xbe   : > { %v830_v8 = vpop.permute.xlu0 %829  ;;  %v1112_v33 = vsel %vm1094_vm9, %v1079_v24, %v846_v63  ;;  %v442_v6 = vrot.slane %v440_v17, 1  ;;  %v966_v17 = vsel %vm962_vm6, %v933_v47, %v2152_v55 }
  0xbf   : > { %771 = vrot.lane.b32.xlu1 %v2215_v60, %s1815_s6  ;;  %v1096_v52 = vsel %vm1094_vm9, %v1063_v27, %v830_v8  ;;  %v543_v34 = vrot.slane %v541_v37, 1  ;;  %v999_v20 = vsel %vm995_vm5, %v966_v17, %v2175_v5  ;;  %v624_v37 = vrot.slane %v2237_v49, 1 }
  0xc0   : > { %755 = vrot.lane.b32.xlu0 %v2227_v7, %s1815_s6  ;;  %v443_v8 = vor.u32 %v442_v6, %v438_v59  ;;  %v1032_v22 = vsel %vm1028_vm7, %v999_v20, %v2191_v25 }
  0xc1   : > { %v848_v15 = vpop.permute.xlu1 %847  ;;  %v544_v62 = vsel %vm352_vm1, %v539_v4, %v543_v34  ;;  %v1065_v57 = vsel %vm1061_vm8, %v1032_v22, %v2211_v61  ;;  %v703_v34 = vrot.slane %v701_v29, 1  ;;  %v742_v22 = vrot.slane %v1742_v53, 1 }
  0xc2   : > { %v832_v30 = vpop.permute.xlu0 %831  ;;  %v1114_v55 = vsel %vm1094_vm9, %v1081_v42, %v848_v15  ;;  %v448_v5 = vsel %vm352_vm1, %v443_v8, %v447_v16 }
  0xc3   : > { %806 = vrot.lane.b32.xlu1 %v2156_v56, %s1816_s7  ;;  %v1098_v31 = vsel %vm1094_vm9, %v1065_v57, %v832_v30  ;;  %v623_v30 = vrot.slane %v2218_v3, 1 }
  0xc4   : > { %790 = vrot.lane.b32.xlu0 %v2162_v58, %s1816_s7 }
  0xc5   : > { %v881_v40 = vpop.permute.xlu1 %880  ;;  %v625_v59 = vsel %vm577_vm0, %v623_v30, %v624_v37  ;;  %v2397_v30 = vld [vmem:[%s1894_s28 + $0xd4] ss:$0 sps:$4 sm:$0x11]  }
  0xc6   : > { %v1145_v41 = vsel %vm1127_vm10, %v1112_v33, %v881_v40  ;;  %v865_v18 = vpop.permute.xlu0 %864  ;;  %v600_v33 = vrot.slane %v2247_v35, 1 }
  0xc7   : > { %808 = vrot.lane.b32.xlu1 %v2218_v3, %s1816_s7  ;;  %1634 = vmatprep.mubr.msk.bf16.mxu1 %vm1187_vm11, %v1145_v41  ;;  %v1129_v63 = vsel %vm1127_vm10, %v1096_v52, %v865_v18  ;;  %v1743_v18 = vld [vmem:[%s1894_s28 + $0xc8] ss:$0 sps:$4 sm:$0x11]  }
  0xc8   : > { %792 = vrot.lane.b32.xlu0 %v2230_v45, %s1816_s7  ;;  %1618 = vmatprep.mubr.msk.bf16.mxu0 %vm1187_vm11, %v1129_v63  ;;  %v601_v27 = vsel %vm577_vm0, %v599_v11, %v600_v33  ;;  %v706_v50 = vshll.u32 %v1743_v18, 16 }
  0xc9   : > { %v2287_v1 = vpop.permute.xlu1 %565 }
  0xca   : > { %v2297_v19 = vpop.permute.xlu0 %549  ;;  %v708_v8 = vrot.slane %v706_v50, 1 }
  0xcb   : > { %853 = vrot.lane.b32.xlu1 %v2195_v26, %s1817_s17  ;;  %v902_v11 = vsel %vm896_vm3, %v1948_v46, %v2297_v19 }
  0xcc   : > { %837 = vrot.lane.b32.xlu0 %v2199_v28, %s1817_s17 }
  0xcd   : > { %v883_v21 = vpop.permute.xlu1 %882 }
  0xce   : > { %v1147_v24 = vsel %vm1127_vm10, %v1114_v55, %v883_v21  ;;  %v867_v36 = vpop.permute.xlu0 %866  ;;  %v743_v55 = vrot.slane %v1743_v18, 1 }
  0xcf   : > { %855 = vrot.lane.b32.xlu1 %v544_v62, %s1817_s17  ;;  %1635 = vmatmul.mubr.msk.bf16.vlgmr.msra.gmra.mrb[0].mxu1 %vm1187_vm11, %v1147_v24  ;;  %v1131_v25 = vsel %vm1127_vm10, %v1098_v31, %v867_v36  ;;  %v2387_v24 = vld [vmem:[%s1894_s28 + $0xcc] sm:$0xff]   ;;  %v918_v31 = vsel %vm896_vm3, %v1942_v39, %v2287_v1 }
  0xd0   : > { %839 = vrot.lane.b32.xlu0 %v448_v5, %s1817_s17  ;;  %1619 = vmatmul.mubr.msk.bf16.vlgmr.msra.gmra.mrb[0].mxu0 %vm1187_vm11, %v1131_v25  ;;  %v820_v37 = vshll.u32 %v2387_v24, 16  ;;  %v818_v46 = vshrl.u32 %v2387_v24, 16 }
  0xd1   : > { %v2321_v15 = vpop.permute.xlu1 %567 }
  0xd2   : > { %v2323_v61 = vpop.permute.xlu0 %551  ;;  %v822_v29 = vrot.slane %v820_v37, 1 }
  0xd3   : > { %888 = vrot.lane.b32.xlu1 %v2215_v60, %s1818_s24 }
  0xd4   : > { %872 = vrot.lane.b32.xlu0 %v2227_v7, %s1818_s24 }
  0xd5   : > { %v647_v32 = vpop.permute.xlu1 %646 }
  0xd6   : > { %v2333_v40 = vpop.permute.xlu0 %630  ;;  %v951_v25 = vsel %vm929_vm4, %v918_v31, %v647_v32 }
  0xd7   : > { %573 = vrot.lane.b32.xlu1 %v2195_v26, %s1813_s4  ;;  %v935_v1 = vsel %vm929_vm4, %v902_v11, %v2333_v40 }
  0xd8   : > { %557 = vrot.lane.b32.xlu0 %v2199_v28, %s1813_s4 }
  0xd9   : > { %v2340_v49 = vpop.permute.xlu1 %648 }
  0xda   : > { %v2343_v41 = vpop.permute.xlu0 %632 }
  0xdb   : > { %890 = vrot.lane.b32.xlu1 %v625_v59, %s1818_s24 }
  0xdc   : > { %874 = vrot.lane.b32.xlu0 %v601_v27, %s1818_s24 }
  0xdd   : > { %v684_v35 = vpop.permute.xlu1 %683 }
  0xde   : > { %v668_v6 = vpop.permute.xlu0 %667  ;;  %v984_v33 = vsel %vm962_vm6, %v951_v25, %v684_v35  ;;  %v862_v25 = vrot.slane %v2397_v30, 1 }
  0xdf   : > { %575 = vrot.lane.b32.xlu1 %v544_v62, %s1813_s4  ;;  %v968_v32 = vsel %vm962_vm6, %v935_v1, %v668_v6 }
  0xe0   : > { %559 = vrot.lane.b32.xlu0 %v448_v5, %s1813_s4  ;;  %s1592_s4 = sshll.u32 %s1862_s16, 12 }
  0xe1   : > { %v2349_v26 = vpop.permute.xlu1 %685 }
  0xe2   : > { %v2351_v28 = vpop.permute.xlu0 %669 }
  0xe3   : > { %654 = vrot.lane.b32.xlu1 %v2215_v60, %s1812_s30  ;;  %v699_v60 = vshrl.u32 %v1742_v53, 16 }
  0xe4   : > { %638 = vrot.lane.b32.xlu0 %v2227_v7, %s1812_s30 }
  0xe5   : > { %v731_v0 = vpop.permute.xlu1 %730  ;;  %v704_v38 = vor.u32 %v703_v34, %v699_v60  ;;  %v825_v60 = vshll.u32 %v2397_v30, 16 }
  0xe6   : > { %v715_v52 = vpop.permute.xlu0 %714 }
  0xe7   : > { %656 = vrot.lane.b32.xlu1 %v625_v59, %s1812_s30  ;;  %v709_v54 = vsel %vm352_vm1, %v704_v38, %v708_v8  ;;  %v1001_v19 = vsel %vm995_vm5, %v968_v32, %v715_v52  ;;  %v920_v52 = vsel %vm896_vm3, %v1990_v10, %v2321_v15  ;;  %v823_v38 = vor.u32 %v822_v29, %v818_v46  ;;  %v1746_v15 = vld [vmem:[%s1894_s28 + $0x6c] sm:$0xff]   ;;  %s1529_s28 = sshll.u32 %s161_s25, 8 }
  0xe8   : > { %640 = vrot.lane.b32.xlu0 %v601_v27, %s1812_s30  ;;  %v827_v8 = vrot.slane %v825_v60, 1 }
  0xe9   : > { %v2361_v63 = vpop.permute.xlu1 %732 }
  0xea   : > { %v2363_v4 = vpop.permute.xlu0 %716  ;;  %v828_v31 = vsel %vm352_vm1, %v823_v38, %v827_v8 }
  0xeb   : > { %691 = vrot.lane.b32.xlu1 %v2218_v3, %s1811_s29 }
  0xec   : > { %675 = vrot.lane.b32.xlu0 %v2230_v45, %s1811_s29 }
  0xed   : > { %v766_v7 = vpop.permute.xlu1 %765 }
  0xee   : > { %v750_v47 = vpop.permute.xlu0 %749 }
  0xef   : > { %693 = vrot.lane.b32.xlu1 %v1742_v53, %s1811_s29  ;;  %v1034_v40 = vsel %vm1028_vm7, %v1001_v19, %v750_v47 }
  0xf0   : > { %677 = vrot.lane.b32.xlu0 %v1907_v2, %s1811_s29  ;;  %s2571_s29 = scalar_lea.vmem [#allocation2], %s1529_s28 }
  0xf1   : > { %v2372_v16 = vpop.permute.xlu1 %767 }
  0xf2   : > { %v2374_v17 = vpop.permute.xlu0 %751 }
  0xf3   : > { %738 = vrot.lane.b32.xlu1 %v544_v62, %s1814_s5  ;;  %v2384_v62 = vsel %vm577_vm0, %v742_v22, %v743_v55 }
  0xf4   : > { %722 = vrot.lane.b32.xlu0 %v448_v5, %s1814_s5 }
  0xf5   : > { %v803_v20 = vpop.permute.xlu1 %802 }
  0xf6   : > { %v787_v42 = vpop.permute.xlu0 %786 }
  0xf7   : > { %740 = vrot.lane.b32.xlu1 %v709_v54, %s1814_s5 }
  0xf8   : > { %724 = vrot.lane.b32.xlu0 %v1958_v51, %s1814_s5  ;;  %s1463_s5 = sshll.u32 %s2571_s29, 4  ;;  %s2636_s5 = int_to_ptr.vmem [resolvable:$true] %s1463_s5 }
  0xf9   : > { %v805_v21 = vpop.permute.xlu1 %804  ;;  %s1747_s9 = scalar_lea.vmem %s2636_s5, 4096  ;;  %p1754_p0 = scmp.lt.s32.totalorder %s2636_s5, %s1752_s11 }
  0xfa   : > { %v789_v57 = vpop.permute.xlu0 %788  ;;  %p1748_p11 = scmp.ne.s32.totalorder %s2636_s5, %s1747_s9 }
  0xfb   : > { %773 = vrot.lane.b32.xlu1 %v625_v59, %s1815_s6  ;;  %v1017_v59 = vsel %vm995_vm5, %v984_v33, %v731_v0 }
  0xfc   : > { %757 = vrot.lane.b32.xlu0 %v601_v27, %s1815_s6  ;;  %v1050_v27 = vsel %vm1028_vm7, %v1017_v59, %v766_v7  ;;  %p1749_p12 = pnand %p1748_p11, %p1879_p5 }
  0xfd   : > { %v850_v5 = vpop.permute.xlu1 %849  ;;  %v1083_v35 = vsel %vm1061_vm8, %v1050_v27, %v803_v20  ;;  %v904_v20 = vsel %vm896_vm3, %v2000_v14, %v2323_v61 }
  0xfe   : > { %v834_v36 = vpop.permute.xlu0 %833  ;;  %v1116_v0 = vsel %vm1094_vm9, %v1083_v35, %v850_v5  ;;  %p1750_p13 = pneg %p1749_p12 }
  0xff   : > { %775 = vrot.lane.b32.xlu1 %v2384_v62, %s1815_s6 }
 0x100   : > { %759 = vrot.lane.b32.xlu0 %v1920_v12, %s1815_s6 }
 0x101   : > { %v852_v39 = vpop.permute.xlu1 %851 }
 0x102   : > { %v836_v18 = vpop.permute.xlu0 %835 }
 0x103   : > { %810 = vrot.lane.b32.xlu1 %v1742_v53, %s1816_s7  ;;  %v1067_v53 = vsel %vm1061_vm8, %v1034_v40, %v787_v42 }
 0x104   : > { %794 = vrot.lane.b32.xlu0 %v1907_v2, %s1816_s7  ;;  %v1100_v50 = vsel %vm1094_vm9, %v1067_v53, %v834_v36  ;;  %v953_v2 = vsel %vm929_vm4, %v920_v52, %v2340_v49  ;;  %v937_v49 = vsel %vm929_vm4, %v904_v20, %v2343_v41 }
 0x105   : > { %v885_v6 = vpop.permute.xlu1 %884  ;;  %v986_v10 = vsel %vm962_vm6, %v953_v2, %v2349_v26  ;;  %v970_v55 = vsel %vm962_vm6, %v937_v49, %v2351_v28 }
 0x106   : > { %v1149_v34 = vsel %vm1127_vm10, %v1116_v0, %v885_v6  ;;  %v869_v7 = vpop.permute.xlu0 %868  ;;  %v1019_v22 = vsel %vm995_vm5, %v986_v10, %v2361_v63  ;;  %v1003_v26 = vsel %vm995_vm5, %v970_v55, %v2363_v4 }
 0x107   : > { %812 = vrot.lane.b32.xlu1 %v2387_v24, %s1816_s7  ;;  %1638 = vmatprep.mubr.msk.bf16.mxu1 %vm1187_vm11, %v1149_v34  ;;  %v1133_v47 = vsel %vm1127_vm10, %v1100_v50, %v869_v7  ;;  %v1052_v14 = vsel %vm1028_vm7, %v1019_v22, %v2372_v16  ;;  %v1036_v41 = vsel %vm1028_vm7, %v1003_v26, %v2374_v17  ;;  %v861_v17 = vrot.slane %v2387_v24, 1 }
 0x108   : > { %796 = vrot.lane.b32.xlu0 %v1746_v15, %s1816_s7  ;;  %1622 = vmatprep.mubr.msk.bf16.mxu0 %vm1187_vm11, %v1133_v47  ;;  %v1085_v5 = vsel %vm1061_vm8, %v1052_v14, %v805_v21  ;;  %v1069_v16 = vsel %vm1061_vm8, %v1036_v41, %v789_v57  ;;  %s2632_s7 = scalar_lea.hbm %s2687_s3, %s1592_s4 }
 0x109   : > { %v570_v42 = vpop.permute.xlu1 %569  ;;  %v1118_v63 = vsel %vm1094_vm9, %v1085_v5, %v852_v39  ;;  %v1102_v36 = vsel %vm1094_vm9, %v1069_v16, %v836_v18  ;;  %v863_v37 = vsel %vm577_vm0, %v861_v17, %v862_v25 }
 0x10a   : > { %v554_v61 = vpop.permute.xlu0 %553 }
 0x10b   : > { %857 = vrot.lane.b32.xlu1 %v709_v54, %s1817_s17  ;;  %v906_v52 = vsel %vm896_vm3, %v2061_v44, %v554_v61 }
 0x10c   : > { %841 = vrot.lane.b32.xlu0 %v1958_v51, %s1817_s17 }
 0x10d   : > { %v887_v28 = vpop.permute.xlu1 %886 }
 0x10e   : > { %v1151_v54 = vsel %vm1127_vm10, %v1118_v63, %v887_v28  ;;  %v871_v4 = vpop.permute.xlu0 %870 }
 0x10f   : > { %859 = vrot.lane.b32.xlu1 %v828_v31, %s1817_s17  ;;  %1639 = vmatmul.mubr.msk.bf16.gmra.mrb[4].mxu1 %vm1187_vm11, %v1151_v54  ;;  %v1135_v21 = vsel %vm1127_vm10, %v1102_v36, %v871_v4 }
 0x110   : > { %843 = vrot.lane.b32.xlu0 %v1953_v48, %s1817_s17  ;;  %1623 = vmatmul.mubr.msk.bf16.gmra.mrb[4].mxu0 %vm1187_vm11, %v1135_v21  ;;  %s1753_s17 = scalar_lea.vmem %s1752_s11, 8192 }
 0x111   : > { %v572_v51 = vpop.permute.xlu1 %571  ;;  %p1755_p1 = scmp.lt.s32.totalorder %s1753_s17, %s1747_s9 }
 0x112   : > { %v556_v57 = vpop.permute.xlu0 %555  ;;  %v924_v55 = vsel %vm896_vm3, %v2090_v9, %v572_v51 }
 0x113   : > { %892 = vrot.lane.b32.xlu1 %v2384_v62, %s1818_s24  ;;  %v908_v31 = vsel %vm896_vm3, %v2095_v13, %v556_v57  ;;  %p1756_p2 = por %p1755_p1, %p1754_p0 }
 0x114   : > { %876 = vrot.lane.b32.xlu0 %v1920_v12, %s1818_s24 }
 0x115   : > { %v651_v11 = vpop.permute.xlu1 %650  ;;  %p1757_p3 = pnand %p1756_p2, %p1750_p13 }
 0x116   : > { %v635_v33 = vpop.permute.xlu0 %634 }
 0x117   : > { %894 = vrot.lane.b32.xlu1 %v863_v37, %s1818_s24  ;;  %v939_v2 = vsel %vm929_vm4, %v906_v52, %v635_v33 }
 0x118   : > { %878 = vrot.lane.b32.xlu0 %v1932_v23, %s1818_s24  ;;  %v922_v23 = vsel %vm896_vm3, %v2056_v43, %v570_v42 }
 0x119   : > { %v653_v48 = vpop.permute.xlu1 %652  ;;  %v955_v34 = vsel %vm929_vm4, %v922_v23, %v651_v11 }
 0x11a   : > { %v637_v24 = vpop.permute.xlu0 %636  ;;  %v957_v26 = vsel %vm929_vm4, %v924_v55, %v653_v48 }
 0x11b   : > { %v941_v28 = vsel %vm929_vm4, %v908_v31, %v637_v24 }
 0x11d   : > { %v688_v30 = vpop.permute.xlu1 %687 }
 0x11e   : > { %v672_v39 = vpop.permute.xlu0 %671  ;;  %v988_v50 = vsel %vm962_vm6, %v955_v34, %v688_v30 }
 0x11f   : > { %v972_v38 = vsel %vm962_vm6, %v939_v2, %v672_v39 }
 0x121   : > { %v690_v1 = vpop.permute.xlu1 %689 }
 0x122   : > { %v674_v59 = vpop.permute.xlu0 %673  ;;  %v990_v41 = vsel %vm962_vm6, %v957_v26, %v690_v1 }
 0x123   : > { %v974_v16 = vsel %vm962_vm6, %v941_v28, %v674_v59 }
 0x125   : > { %v735_v32 = vpop.permute.xlu1 %734 }
 0x126   : > { %v719_v62 = vpop.permute.xlu0 %718  ;;  %v1021_v47 = vsel %vm995_vm5, %v988_v50, %v735_v32 }
 0x127   : > { %v1005_v43 = vsel %vm995_vm5, %v972_v38, %v719_v62 }
 0x129   : > { %v737_v27 = vpop.permute.xlu1 %736 }
 0x12a   : > { %v721_v18 = vpop.permute.xlu0 %720  ;;  %v1023_v9 = vsel %vm995_vm5, %v990_v41, %v737_v27 }
 0x12b   : > { %v1007_v4 = vsel %vm995_vm5, %v974_v16, %v721_v18 }
 0x12d   : > { %v770_v46 = vpop.permute.xlu1 %769 }
 0x12e   : > { %v754_v19 = vpop.permute.xlu0 %753  ;;  %v1054_v8 = vsel %vm1028_vm7, %v1021_v47, %v770_v46 }
 0x12f   : > { %v1038_v15 = vsel %vm1028_vm7, %v1005_v43, %v754_v19 }
 0x131   : > { %v772_v12 = vpop.permute.xlu1 %771 }
 0x132   : > { %v756_v35 = vpop.permute.xlu0 %755  ;;  %v1056_v54 = vsel %vm1028_vm7, %v1023_v9, %v772_v12 }
 0x133   : > { %v1040_v13 = vsel %vm1028_vm7, %v1007_v4, %v756_v35 }
 0x135   : > { %v807_v29 = vpop.permute.xlu1 %806 }
 0x136   : > { %v791_v60 = vpop.permute.xlu0 %790  ;;  %v1087_v10 = vsel %vm1061_vm8, %v1054_v8, %v807_v29 }
 0x137   : > { %v1071_v49 = vsel %vm1061_vm8, %v1038_v15, %v791_v60 }
 0x139   : > { %v809_v40 = vpop.permute.xlu1 %808 }
 0x13a   : > { %v793_v0 = vpop.permute.xlu0 %792  ;;  %v1089_v21 = vsel %vm1061_vm8, %v1056_v54, %v809_v40 }
 0x13b   : > { %v1073_v51 = vsel %vm1061_vm8, %v1040_v13, %v793_v0 }
 0x13d   : > { %v854_v6 = vpop.permute.xlu1 %853 }
 0x13e   : > { %v838_v53 = vpop.permute.xlu0 %837  ;;  %v1120_v44 = vsel %vm1094_vm9, %v1087_v10, %v854_v6 }
 0x13f   : > { %v1104_v14 = vsel %vm1094_vm9, %v1071_v49, %v838_v53 }
 0x141   : > { %v856_v7 = vpop.permute.xlu1 %855 }
 0x142   : > { %v840_v20 = vpop.permute.xlu0 %839  ;;  %v1122_v17 = vsel %vm1094_vm9, %v1089_v21, %v856_v7 }
 0x143   : > { %v1106_v37 = vsel %vm1094_vm9, %v1073_v51, %v840_v20 }
 0x145   : > { %v889_v42 = vpop.permute.xlu1 %888 }
 0x146   : > { %v1153_v22 = vsel %vm1127_vm10, %v1120_v44, %v889_v42  ;;  %v873_v61 = vpop.permute.xlu0 %872 }
 0x147   : > { %1642 = vmatprep.mubr.msk.bf16.mxu1 %vm1187_vm11, %v1153_v22  ;;  %v1137_v5 = vsel %vm1127_vm10, %v1104_v14, %v873_v61 }
 0x148   : > { %1626 = vmatprep.mubr.msk.bf16.mxu0 %vm1187_vm11, %v1137_v5 }
 0x149   : > { %v574_v63 = vpop.permute.xlu1 %573 }
 0x14a   : > { %v558_v36 = vpop.permute.xlu0 %557  ;;  %v926_v50 = vsel %vm896_vm3, %v2156_v56, %v574_v63 }
 0x14b   : > { %v910_v47 = vsel %vm896_vm3, %v2162_v58, %v558_v36 }
 0x14d   : > { %v891_v25 = vpop.permute.xlu1 %890 }
 0x14e   : > { %v1155_v57 = vsel %vm1127_vm10, %v1122_v17, %v891_v25  ;;  %v875_v11 = vpop.permute.xlu0 %874 }
 0x14f   : > { %1643 = vmatmul.mubr.msk.bf16.gmra.mrb[8].mxu1 %vm1187_vm11, %v1155_v57  ;;  %v1139_v33 = vsel %vm1127_vm10, %v1106_v37, %v875_v11  ;;  %v2561_v11 = vld [vmem:[%s2686_s2] ss:$0 sm:$0xff] }
 0x150   : > { %1627 = vmatmul.mubr.msk.bf16.gmra.mrb[8].mxu0 %vm1187_vm11, %v1139_v33 }
 0x151   : > { %v576_v48 = vpop.permute.xlu1 %575 }
 0x152   : > { %v560_v24 = vpop.permute.xlu0 %559  ;;  %v928_v10 = vsel %vm896_vm3, %v2218_v3, %v576_v48 }
 0x153   : > { %v912_v22 = vsel %vm896_vm3, %v2230_v45, %v560_v24 }
 0x155   : > { %v655_v30 = vpop.permute.xlu1 %654 }
 0x156   : > { %v639_v39 = vpop.permute.xlu0 %638  ;;  %v959_v2 = vsel %vm929_vm4, %v926_v50, %v655_v30 }
 0x157   : > { %v943_v20 = vsel %vm929_vm4, %v910_v47, %v639_v39 }
 0x159   : > { %v657_v1 = vpop.permute.xlu1 %656 }
 0x15a   : > { %v641_v59 = vpop.permute.xlu0 %640  ;;  %v961_v42 = vsel %vm929_vm4, %v928_v10, %v657_v1 }
 0x15b   : > { %v945_v26 = vsel %vm929_vm4, %v912_v22, %v641_v59 }
 0x15d   : > { %v692_v32 = vpop.permute.xlu1 %691 }
 0x15e   : > { %v676_v62 = vpop.permute.xlu0 %675  ;;  %v992_v38 = vsel %vm962_vm6, %v959_v2, %v692_v32 }
 0x15f   : > { %v976_v15 = vsel %vm962_vm6, %v943_v20, %v676_v62 }
 0x161   : > { %v694_v27 = vpop.permute.xlu1 %693 }
 0x162   : > { %v678_v18 = vpop.permute.xlu0 %677  ;;  %v994_v55 = vsel %vm962_vm6, %v961_v42, %v694_v27 }
 0x163   : > { %v978_v63 = vsel %vm962_vm6, %v945_v26, %v678_v18 }
 0x165   : > { %v739_v46 = vpop.permute.xlu1 %738 }
 0x166   : > { %v723_v19 = vpop.permute.xlu0 %722  ;;  %v1025_v43 = vsel %vm995_vm5, %v992_v38, %v739_v46 }
 0x167   : > { %v1009_v49 = vsel %vm995_vm5, %v976_v15, %v723_v19 }
 0x169   : > { %v741_v12 = vpop.permute.xlu1 %740 }
 0x16a   : > { %v725_v35 = vpop.permute.xlu0 %724  ;;  %v1027_v5 = vsel %vm995_vm5, %v994_v55, %v741_v12 }
 0x16b   : > { %v1011_v16 = vsel %vm995_vm5, %v978_v63, %v725_v35 }
 0x16d   : > { %v774_v29 = vpop.permute.xlu1 %773 }
 0x16e   : > { %v758_v60 = vpop.permute.xlu0 %757  ;;  %v1058_v56 = vsel %vm1028_vm7, %v1025_v43, %v774_v29 }
 0x16f   : > { %v1042_v14 = vsel %vm1028_vm7, %v1009_v49, %v758_v60 }
 0x171   : > { %v776_v40 = vpop.permute.xlu1 %775 }
 0x172   : > { %v760_v0 = vpop.permute.xlu0 %759  ;;  %v1060_v28 = vsel %vm1028_vm7, %v1027_v5, %v776_v40 }
 0x173   : > { %v1044_v4 = vsel %vm1028_vm7, %v1011_v16, %v760_v0 }
 0x175   : > { %v811_v6 = vpop.permute.xlu1 %810 }
 0x176   : > { %v795_v23 = vpop.permute.xlu0 %794  ;;  %v1091_v58 = vsel %vm1061_vm8, %v1058_v56, %v811_v6 }
 0x177   : > { %v1075_v31 = vsel %vm1061_vm8, %v1042_v14, %v795_v23 }
 0x179   : > { %v813_v53 = vpop.permute.xlu1 %812 }
 0x17a   : > { %v797_v34 = vpop.permute.xlu0 %796  ;;  %v1093_v54 = vsel %vm1061_vm8, %v1060_v28, %v813_v53 }
 0x17b   : > { %v1077_v17 = vsel %vm1061_vm8, %v1044_v4, %v797_v34 }
 0x17d   : > { %v858_v52 = vpop.permute.xlu1 %857 }
 0x17e   : > { %v842_v7 = vpop.permute.xlu0 %841  ;;  %v1124_v3 = vsel %vm1094_vm9, %v1091_v58, %v858_v52 }
 0x17f   : > { %v1108_v45 = vsel %vm1094_vm9, %v1075_v31, %v842_v7 }
 0x181   : > { %v860_v8 = vpop.permute.xlu1 %859 }
 0x182   : > { %v844_v44 = vpop.permute.xlu0 %843  ;;  %v1126_v21 = vsel %vm1094_vm9, %v1093_v54, %v860_v8 }
 0x183   : > { %v1110_v51 = vsel %vm1094_vm9, %v1077_v17, %v844_v44 }
 0x185   : > { %v893_v61 = vpop.permute.xlu1 %892 }
 0x186   : > { %v1157_v41 = vsel %vm1127_vm10, %v1124_v3, %v893_v61  ;;  %v877_v9 = vpop.permute.xlu0 %876 }
 0x187   : > { %1646 = vmatprep.mubr.msk.bf16.mxu1 %vm1187_vm11, %v1157_v41  ;;  %v1141_v36 = vsel %vm1127_vm10, %v1108_v45, %v877_v9 }
 0x188   : > { %1630 = vmatprep.mubr.msk.bf16.mxu0 %vm1187_vm11, %v1141_v36 }
 0x189   : > { %v895_v13 = vpop.permute.xlu1 %894 }
 0x18a   : > { %v1159_v25 = vsel %vm1127_vm10, %v1126_v21, %v895_v13  ;;  %v879_v57 = vpop.permute.xlu0 %878 }
 0x18b   : > { %1647 = vmatmul.mubr.msk.bf16.gmra.mrb[12].mxu1 %vm1187_vm11, %v1159_v25  ;;  %v1143_v37 = vsel %vm1127_vm10, %v1110_v51, %v879_v57 }
 0x18c   : > { %1631 = vmatmul.mubr.msk.bf16.gmra.mrb[12].mxu0 %vm1187_vm11, %v1143_v37 }
 0x1a2   : > { %v1636_v33 = vpop.f32.mrb[0].mxu1 }
 0x1a3   : > { %v1331_v48 = vadd.f32 %v1636_v33, %v2561_v11  ;;  %v1322_v24 = vpop.f32.mrb[1].mxu1  ;;  %v1620_v30 = vpop.f32.mrb[0].mxu0 }
 0x1a4   : > { %v1323_v39 = vadd.f32 %v2561_v11, %v1322_v24  ;;  %v1637_v1 = vpop.f32.mrb[2].mxu1  ;;  %v1267_v59 = vadd.f32 %v1620_v30, %v2561_v11  ;;  %v1258_v62 = vpop.f32.mrb[1].mxu0 }
 0x1a5   : > { %v1403_v32 = vmax.f32 %v1331_v48, 0.0  ;;  %v1334_v27 = vadd.f32 %v1637_v1, %v2561_v11  ;;  %v1325_v18 = vpop.f32.mrb[3].mxu1  ;;  %v1259_v46 = vadd.f32 %v2561_v11, %v1258_v62  ;;  %v1621_v12 = vpop.f32.mrb[2].mxu0 }
 0x1a6   : > { %v1401_v19 = vmax.f32 %v1323_v39, 0.0  ;;  %v1326_v35 = vadd.f32 %v2561_v11, %v1325_v18  ;;  %v1387_v29 = vmax.f32 %v1267_v59, 0.0  ;;  %v1270_v60 = vadd.f32 %v1621_v12, %v2561_v11  ;;  %v1261_v0 = vpop.f32.mrb[3].mxu0 }
 0x1a7   : > { %1435 = vst [vmem:[%s2571_s29 + $0x90] sm:$0xff] %v1403_v32  ;;  %v1404_v40 = vmax.f32 %v1334_v27, 0.0  ;;  %v1385_v6 = vmax.f32 %v1259_v46, 0.0  ;;  %v1262_v23 = vadd.f32 %v2561_v11, %v1261_v0 }
 0x1a8   : > { %1433 = vst [vmem:[%s2571_s29 + $0x80] sm:$0xff] %v1401_v19  ;;  %v1402_v53 = vmax.f32 %v1326_v35, 0.0  ;;  %1419 = vst [vmem:[%s2571_s29 + $0x10] sm:$0xff] %v1387_v29  ;;  %v1388_v34 = vmax.f32 %v1270_v60, 0.0 }
 0x1a9   : > { %1436 = vst [vmem:[%s2571_s29 + $0x98] sm:$0xff] %v1404_v40  ;;  %1417 = vst [vmem:[%s2571_s29] sm:$0xff] %v1385_v6  ;;  %v1386_v52 = vmax.f32 %v1262_v23, 0.0 }
 0x1aa   : > { %1434 = vst [vmem:[%s2571_s29 + $0x88] sm:$0xff] %v1402_v53  ;;  %1420 = vst [vmem:[%s2571_s29 + $0x18] sm:$0xff] %v1388_v34 }
 0x1ab   : > { %1418 = vst [vmem:[%s2571_s29 + $0x8] sm:$0xff] %v1386_v52 }
 0x1e2   : > { %v1640_v50 = vpop.f32.mrb[4].mxu1 }
 0x1e3   : > { %v1347_v7 = vadd.f32 %v1640_v50, %v2561_v11  ;;  %v1338_v2 = vpop.f32.mrb[5].mxu1  ;;  %v1624_v47 = vpop.f32.mrb[4].mxu0 }
 0x1e4   : > { %v1339_v38 = vadd.f32 %v2561_v11, %v1338_v2  ;;  %v1641_v8 = vpop.f32.mrb[6].mxu1  ;;  %v1283_v20 = vadd.f32 %v1624_v47, %v2561_v11  ;;  %v1274_v10 = vpop.f32.mrb[5].mxu0 }
 0x1e5   : > { %v1407_v43 = vmax.f32 %v1347_v7, 0.0  ;;  %v1350_v15 = vadd.f32 %v1641_v8, %v2561_v11  ;;  %v1341_v56 = vpop.f32.mrb[7].mxu1  ;;  %v1275_v44 = vadd.f32 %v2561_v11, %v1274_v10  ;;  %v1625_v49 = vpop.f32.mrb[6].mxu0 }
 0x1e6   : > { %v1405_v42 = vmax.f32 %v1339_v38, 0.0  ;;  %v1342_v58 = vadd.f32 %v2561_v11, %v1341_v56  ;;  %v1391_v22 = vmax.f32 %v1283_v20, 0.0  ;;  %v1286_v55 = vadd.f32 %v1625_v49, %v2561_v11  ;;  %v1277_v3 = vpop.f32.mrb[7].mxu0 }
 0x1e7   : > { %1439 = vst [vmem:[%s2571_s29 + $0xb0] sm:$0xff] %v1407_v43  ;;  %v1408_v14 = vmax.f32 %v1350_v15, 0.0  ;;  %v1389_v61 = vmax.f32 %v1275_v44, 0.0  ;;  %v1278_v26 = vadd.f32 %v2561_v11, %v1277_v3 }
 0x1e8   : > { %1437 = vst [vmem:[%s2571_s29 + $0xa0] sm:$0xff] %v1405_v42  ;;  %v1406_v5 = vmax.f32 %v1342_v58, 0.0  ;;  %1423 = vst [vmem:[%s2571_s29 + $0x30] sm:$0xff] %v1391_v22  ;;  %v1392_v31 = vmax.f32 %v1286_v55, 0.0 }
 0x1e9   : > { %1440 = vst [vmem:[%s2571_s29 + $0xb8] sm:$0xff] %v1408_v14  ;;  %1421 = vst [vmem:[%s2571_s29 + $0x20] sm:$0xff] %v1389_v61  ;;  %v1390_v41 = vmax.f32 %v1278_v26, 0.0 }
 0x1ea   : > { %1438 = vst [vmem:[%s2571_s29 + $0xa8] sm:$0xff] %v1406_v5  ;;  %1424 = vst [vmem:[%s2571_s29 + $0x38] sm:$0xff] %v1392_v31 }
 0x1eb   : > { %1422 = vst [vmem:[%s2571_s29 + $0x28] sm:$0xff] %v1390_v41 }
 0x222   : > { %v1644_v63 = vpop.f32.mrb[8].mxu1 }
 0x223   : > { %v1363_v28 = vadd.f32 %v1644_v63, %v2561_v11  ;;  %v1354_v45 = vpop.f32.mrb[9].mxu1  ;;  %v1628_v9 = vpop.f32.mrb[8].mxu0 }
 0x224   : > { %v1355_v16 = vadd.f32 %v2561_v11, %v1354_v45  ;;  %v1645_v54 = vpop.f32.mrb[10].mxu1  ;;  %v1299_v36 = vadd.f32 %v1628_v9, %v2561_v11  ;;  %v1290_v21 = vpop.f32.mrb[9].mxu0 }
 0x225   : > { %v1411_v4 = vmax.f32 %v1363_v28, 0.0  ;;  %v1366_v13 = vadd.f32 %v1645_v54, %v2561_v11  ;;  %v1357_v17 = vpop.f32.mrb[11].mxu1  ;;  %v1291_v25 = vadd.f32 %v2561_v11, %v1290_v21  ;;  %v1629_v57 = vpop.f32.mrb[10].mxu0 }
 0x226   : > { %v1409_v51 = vmax.f32 %v1355_v16, 0.0  ;;  %v1358_v37 = vadd.f32 %v2561_v11, %v1357_v17  ;;  %v1395_v33 = vmax.f32 %v1299_v36, 0.0  ;;  %v1302_v48 = vadd.f32 %v1629_v57, %v2561_v11  ;;  %v1293_v30 = vpop.f32.mrb[11].mxu0 }
 0x227   : > { %1443 = vst [vmem:[%s2571_s29 + $0xd0] sm:$0xff] %v1411_v4  ;;  %v1412_v24 = vmax.f32 %v1366_v13, 0.0  ;;  %v1393_v39 = vmax.f32 %v1291_v25, 0.0  ;;  %v1294_v1 = vadd.f32 %v2561_v11, %v1293_v30 }
 0x228   : > { %1441 = vst [vmem:[%s2571_s29 + $0xc0] sm:$0xff] %v1409_v51  ;;  %v1410_v59 = vmax.f32 %v1358_v37, 0.0  ;;  %1427 = vst [vmem:[%s2571_s29 + $0x50] sm:$0xff] %v1395_v33  ;;  %v1396_v32 = vmax.f32 %v1302_v48, 0.0 }
 0x229   : > { %1444 = vst [vmem:[%s2571_s29 + $0xd8] sm:$0xff] %v1412_v24  ;;  %1425 = vst [vmem:[%s2571_s29 + $0x40] sm:$0xff] %v1393_v39  ;;  %v1394_v62 = vmax.f32 %v1294_v1, 0.0 }
 0x22a   : > { %1442 = vst [vmem:[%s2571_s29 + $0xc8] sm:$0xff] %v1410_v59  ;;  %1428 = vst [vmem:[%s2571_s29 + $0x58] sm:$0xff] %v1396_v32 }
 0x22b   : > { %1426 = vst [vmem:[%s2571_s29 + $0x48] sm:$0xff] %v1394_v62 }
 0x25e   : > { %v1648_v27 = vpop.f32.mrb[12].mxu1 }
 0x25f   : > { %v1379_v18 = vadd.f32 %v1648_v27, %v2561_v11  ;;  %v1370_v46 = vpop.f32.mrb[13].mxu1  ;;  %v1632_v19 = vpop.f32.mrb[12].mxu0 }
 0x260   : > { %v1371_v12 = vadd.f32 %v2561_v11, %v1370_v46  ;;  %v1649_v35 = vpop.f32.mrb[14].mxu1  ;;  %v1315_v29 = vadd.f32 %v1632_v19, %v2561_v11  ;;  %v1306_v40 = vpop.f32.mrb[13].mxu0 }
 0x261   : > { %v1415_v60 = vmax.f32 %v1379_v18, 0.0  ;;  %v1382_v0 = vadd.f32 %v1649_v35, %v2561_v11  ;;  %v1373_v6 = vpop.f32.mrb[15].mxu1  ;;  %v1307_v23 = vadd.f32 %v2561_v11, %v1306_v40  ;;  %v1633_v34 = vpop.f32.mrb[14].mxu0 }
 0x262   : > { %v1413_v53 = vmax.f32 %v1371_v12, 0.0  ;;  %v1374_v52 = vadd.f32 %v2561_v11, %v1373_v6  ;;  %v1399_v50 = vmax.f32 %v1315_v29, 0.0  ;;  %v1318_v7 = vadd.f32 %v1633_v34, %v2561_v11  ;;  %v1309_v47 = vpop.f32.mrb[15].mxu0 }
 0x263   : > { %1447 = vst [vmem:[%s2571_s29 + $0xf0] sm:$0xff] %v1415_v60  ;;  %v1416_v2 = vmax.f32 %v1382_v0, 0.0  ;;  %v1397_v38 = vmax.f32 %v1307_v23, 0.0  ;;  %v1310_v8 = vadd.f32 %v2561_v11, %v1309_v47 }
 0x264   : > { %1445 = vst [vmem:[%s2571_s29 + $0xe0] sm:$0xff] %v1413_v53  ;;  %v1414_v20 = vmax.f32 %v1374_v52, 0.0  ;;  %1431 = vst [vmem:[%s2571_s29 + $0x70] sm:$0xff] %v1399_v50  ;;  %v1400_v43 = vmax.f32 %v1318_v7, 0.0 }
 0x265   : > { %1448 = vst [vmem:[%s2571_s29 + $0xf8] sm:$0xff] %v1416_v2  ;;  %1429 = vst [vmem:[%s2571_s29 + $0x60] sm:$0xff] %v1397_v38  ;;  %v1398_v10 = vmax.f32 %v1310_v8, 0.0 }
 0x266   : > { %1446 = vst [vmem:[%s2571_s29 + $0xe8] sm:$0xff] %v1414_v20  ;;  %1432 = vst [vmem:[%s2571_s29 + $0x78] sm:$0xff] %v1400_v43 }
 0x267   : > { %1430 = vst [vmem:[%s2571_s29 + $0x68] sm:$0xff] %v1398_v10 }
 0x268   : > { %1760 = shalt.err (!%p1757_p3)
}
 0x269   : > { %s1761_s19 = scalar_lea.hbm %s2632_s7, 4096  ;;  %s1765_s25 = scalar_lea.hbm %s2687_s3, 8192 }
 0x26a   : > { %p1762_p4 = scmp.ne.s32.totalorder %s2632_s7, %s1761_s19  ;;  %p1766_p9 = scmp.lt.u32.totalorder %s2632_s7, %s2687_s3 }
 0x26b   : > { %p1767_p10 = scmp.lt.u32.totalorder %s1765_s25, %s1761_s19  ;;  %p1769_p12 = scmp.lt.u32.totalorder %s1761_s19, %s2632_s7 }
 0x26c   : > { %p1763_p7 = pnand %p1762_p4, %p1879_p5 }
 0x26d   : > { %p1768_p11 = por %p1767_p10, %p1766_p9 }
 0x26e   : > { %p1764_p8 = pneg %p1763_p7 }
 0x26f   : > { %p1770_p13 = por %p1769_p12, %p1768_p11 }
 0x271   : > { %p1771_p0 = pnand %p1770_p13, %p1764_p8 }
 0x273   : > { %1774 = shalt.err (!%p1771_p0)
}
 0x274   : > { %s1820_s28 = smov 128  }
 0x275   : > { %1659 = dma.vmem_to_hbm [thread:$0]  (%p1879_p5), %s2636_s5, 4096, %s2632_s7, %s2642_s8, %s1820_s28, %s1820_s28, %s1812_s30  }
 0x276 PF: > { %p1665_p1 = scmp.ge.s32.totalorder %s1809_s15, 2  ;;  %s1478_s29 = sand.u32 1, %s1797_s12  }
 0x277   : > { %s1479_s4 = scalar_lea.sflag [#allocation3], %s1478_s29 }
 0x278   : > { %p1662_p2 = pnand %p1665_p1, %p1883_p6 }
 0x27a   : > { %1792 = dma.done.wait (!%p1662_p2), %s1479_s4, 4096  }
 0x27b   : > { %1794 = vsyncadd (!%p1662_p2), %s1479_s4, 4294963200  ;;  %p13_p3 = scmp.ge.s32.totalorder %s1866_s18, 4   ;;  %s2690_s12 = smov %s1801_s13 }
 0x27c   : > { %s2691_s13 = smov %s1805_s14  ;;  %s2692_s14 = smov %s1877_s21 }
 0x27d   : > { %s2693_s15 = smov %s1866_s18  ;;  %15 = sbr.rel (!%p13_p3) target bundleno = 3 (0x3), region = 67 }
 0x284   :  { %1484 = vsyncpa [#allocation3], 1 }
 0x285   :  { %1486 = vsyncpa [#allocation3 + $0x1], 1 }

</bundles_post_ra>
